<compile_context>
chip_gen: v7x
topology: tpu7x:2x2x1
jax: 0.10.0
libtpu: 0.0.40
codegen_flags: <defaults>
</compile_context>

<pallas_src>
import jax
import jax.numpy as jnp
from jax.experimental import pallas as pl
from jax.experimental.pallas import tpu as pltpu


def _patch_embed_kernel(p_ref, w_ref, b_ref, o_ref):
    # p_ref: (tm, K)   compute-dtype im2col patch tile
    # w_ref: (K, te)   compute-dtype projection tile (conv weight reshaped/transposed)
    # b_ref: (1, te)   f32 bias tile
    # o_ref: (tm, te)  output tile (te % 128 == 0 -> lane-dense stores)
    acc = jnp.dot(p_ref[...], w_ref[...], preferred_element_type=jnp.float32)
    o_ref[...] = (acc + b_ref[...]).astype(o_ref.dtype)


def _choose_tm(M, K, te, in_bytes, out_bytes, vmem_budget=20 << 20):
    """M tile: target ~8 grid steps (keeps both v7x TCs busy), as large as possible up
    to 2048 rows (amortizes the ~0.35us/step pipeline overhead), multiple of 16 (bf16
    sublane pack), shrunk until the double-buffered tiles fit the VMEM budget."""
    tm = pl.next_power_of_2(max(pl.cdiv(M, 8), 1))
    tm = max(16, min(2048, tm))
    while tm > 16 and 2 * tm * (K * in_bytes + te * out_bytes) > vmem_budget:
        tm //= 2
    return tm


def fixed_patch_embedding_4x4(x, weight, bias, *, compute_dtype=jnp.bfloat16,
                              out_dtype=None, tm=None):
    """Forward pass of FixedPatchEmbedding4x4.

    x: (B, C, H, W) NCHW.  weight: (E, C, 4, 4) OIHW.  bias: (E,).
    Returns (B, N, E) with N = ceil(H/4) * ceil(W/4); this matches the module, whose
    forward explicitly F.pads H/W up to multiples of 4 before the stride-4 conv
    (norm_layer=None -> Identity, so no norm is applied).

    compute_dtype: dtype of the patch / weight streams fed to the MXU (accumulation is
      always f32).  bf16 (default) halves that stream; pass jnp.float32 for a
      bit-faithful f32 conv.
    out_dtype: output dtype, defaults to x.dtype.  The output is the dominant HBM
      stream whenever E >= ~2*C*16, so pass jnp.bfloat16 if downstream consumes bf16.
    """
    B, C, H, W = x.shape
    E = weight.shape[0]
    out_dtype = x.dtype if out_dtype is None else out_dtype

    # Module's forward pads H/W up to multiples of 4 before the conv.
    pad_h = (-H) % 4
    pad_w = (-W) % 4
    if pad_h or pad_w:
        x = jnp.pad(x, ((0, 0), (0, 0), (0, pad_h), (0, pad_w)))
    Hp, Wp = (H + pad_h) // 4, (W + pad_w) // 4
    N = Hp * Wp
    K = C * 16
    M = B * N

    # im2col (XLA-side vectorized transpose): patch vector ordered (c, kh, kw) to match
    # the Conv2d OIHW weight layout.  The kernel then sees dense, lane-aligned tiles.
    patches = x.reshape(B, C, Hp, 4, Wp, 4)
    patches = patches.transpose(0, 2, 4, 1, 3, 5).reshape(M, K).astype(compute_dtype)

    # Lane-dense weights / output: pad E up to a multiple of 128 only when needed
    # (the tiny K x E weight / bias copy is the only thing padded; the big patch and
    # output arrays are never padded or sliced when E is already lane-aligned).
    Ep = pl.cdiv(E, 128) * 128
    pad_e = Ep - E
    w_mat = weight.reshape(E, K).T.astype(compute_dtype)      # (K, E)
    b_vec = bias.astype(jnp.float32)
    if pad_e:
        w_mat = jnp.pad(w_mat, ((0, 0), (0, pad_e)))
        b_vec = jnp.pad(b_vec, (0, pad_e))
    b_row = b_vec.reshape(1, Ep)

    # E tile: keep whole E resident when small; tile it for huge embed dims so
    # double-buffered output tiles stay inside VMEM (esp. v7x's 64 MiB physical).
    if Ep <= 1024:
        te = Ep
    else:
        te = max(t for t in (1024, 512, 256, 128) if Ep % t == 0)

    in_bytes = jnp.dtype(compute_dtype).itemsize
    out_bytes = jnp.dtype(out_dtype).itemsize
    if tm is None:
        tm = _choose_tm(M, K, te, in_bytes, out_bytes)
    gm = pl.cdiv(M, tm)          # ragged final block handled by Pallas masking
    ge = Ep // te

    cost = pl.CostEstimate(
        flops=2 * M * K * Ep,
        transcendentals=0,
        bytes_accessed=M * K * in_bytes + K * Ep * in_bytes + Ep * 4 + M * Ep * out_bytes,
    )

    out = pl.pallas_call(
        _patch_embed_kernel,
        out_shape=jax.ShapeDtypeStruct((M, Ep), out_dtype),
        grid=(gm, ge),
        in_specs=[
            pl.BlockSpec((tm, K), lambda i, j: (i, 0)),    # patches: streamed over M
            pl.BlockSpec((K, te), lambda i, j: (0, j)),    # weights: resident / E-tiled
            pl.BlockSpec((1, te), lambda i, j: (0, j)),    # bias
        ],
        out_specs=pl.BlockSpec((tm, te), lambda i, j: (i, j)),
        compiler_params=pltpu.CompilerParams(
            dimension_semantics=("parallel", "parallel"),
            vmem_limit_bytes=32 << 20,   # safe on v5e/v6e/v7x; tiles budgeted to ~20MiB
        ),
        cost_estimate=cost,
    )(patches, w_mat, b_row)

    if pad_e:
        # Only hit when E is not a multiple of 128 (real embed dims skip this copy).
        out = out[:, :E]
    return out.reshape(B, N, E)


def _reference(x, weight, bias):
    """Pure-JAX f32 reference (lax conv, padded like the module's forward)."""
    pad_h = (-x.shape[2]) % 4
    pad_w = (-x.shape[3]) % 4
    if pad_h or pad_w:
        x = jnp.pad(x, ((0, 0), (0, 0), (0, pad_h), (0, pad_w)))
    y = jax.lax.conv_general_dilated(
        x, weight, window_strides=(4, 4), padding="VALID",
        dimension_numbers=("NCHW", "OIHW", "NCHW"))
    y = y + bias[None, :, None, None]
    B_, E, Hp, Wp = y.shape
    return y.reshape(B_, E, Hp * Wp).transpose(0, 2, 1)


if __name__ == "__main__":
    key = jax.random.PRNGKey(0)
    ks = jax.random.split(key, 6)

    # Config 1: lane-aligned embed dim (E % 128 == 0) -> zero-pad/zero-slice fast path.
    B, C, H, W, E = 2, 4, 16, 16, 128
    fan_in = C * 16
    bound = 1.0 / (fan_in ** 0.5)
    x = jax.random.normal(ks[0], (B, C, H, W), dtype=jnp.float32)
    weight = jax.random.uniform(ks[1], (E, C, 4, 4),
                                minval=-bound, maxval=bound, dtype=jnp.float32)
    bias = jax.random.uniform(ks[2], (E,),
                              minval=-bound, maxval=bound, dtype=jnp.float32)

    out = jax.block_until_ready(fixed_patch_embedding_4x4(x, weight, bias))
    ref = _reference(x, weight, bias)
    assert out.shape == (B, (H // 4) * (W // 4), E), out.shape
    # bf16 patch/weight streams with f32 accumulation vs pure-f32 conv reference.
    assert jnp.allclose(out, ref, atol=3e-2, rtol=3e-2), "config1 mismatch vs reference"

    # Config 2: non-multiple-of-4 spatial dims (module's F.pad path), E not a multiple
    # of 128 (padded-weight path) and a ragged final M block.
    B2, C2, H2, W2, E2 = 2, 3, 18, 15, 32
    bound2 = 1.0 / ((C2 * 16) ** 0.5)
    x2 = jax.random.normal(ks[3], (B2, C2, H2, W2), dtype=jnp.float32)
    w2 = jax.random.uniform(ks[4], (E2, C2, 4, 4),
                            minval=-bound2, maxval=bound2, dtype=jnp.float32)
    b2 = jax.random.uniform(ks[5], (E2,),
                            minval=-bound2, maxval=bound2, dtype=jnp.float32)

    out2 = jax.block_until_ready(fixed_patch_embedding_4x4(x2, w2, b2))
    ref2 = _reference(x2, w2, b2)
    assert out2.shape == (B2, 5 * 4, E2), out2.shape
    assert jnp.allclose(out2, ref2, atol=3e-2, rtol=3e-2), "config2 mismatch vs reference"

    print("KERNEL_OK")
</pallas_src>

<mosaic_0001>
module attributes {stable_mosaic.version = 11 : i64} {
  func.func @_patch_embed_kernel(%arg0: i32, %arg1: i32, %arg2: memref<16x64xbf16, #tpu.memory_space<vmem>>, %arg3: memref<64x128xbf16, #tpu.memory_space<vmem>>, %arg4: memref<1x128xf32, #tpu.memory_space<vmem>>, %arg5: memref<16x128xf32, #tpu.memory_space<vmem>>) attributes {dimension_semantics = [#tpu.dimension_semantics<parallel>, #tpu.dimension_semantics<parallel>], iteration_bounds = array<i64: 2, 1>, scalar_prefetch = 0 : i64, scratch_operands = 0 : i64, tpu.core_type = #tpu.core_type<tc>, window_params = [{transform_indices = @transform_0, window_bounds = array<i64: 16, 64>}, {transform_indices = @transform_1, window_bounds = array<i64: 64, 128>}, {transform_indices = @transform_2, window_bounds = array<i64: 1, 128>}, {transform_indices = @transform_3, window_bounds = array<i64: 16, 128>}]} {
    %c0 = arith.constant 0 : index
    %c0_0 = arith.constant 0 : index
    %0 = vector.load %arg2[%c0, %c0_0] : memref<16x64xbf16, #tpu.memory_space<vmem>>, vector<16x64xbf16>
    %c0_1 = arith.constant 0 : index
    %c0_2 = arith.constant 0 : index
    %1 = vector.load %arg3[%c0_1, %c0_2] : memref<64x128xbf16, #tpu.memory_space<vmem>>, vector<64x128xbf16>
    %cst = arith.constant dense<0.000000e+00> : vector<16x128xf32>
    %2 = tpu.matmul %0, %1, %cst {dimension_numbers = #tpu.dot_dimension_numbers<[1], [0], [0], [1], [0, 0, 1, 1], [], []>} : vector<16x64xbf16>, vector<64x128xbf16>, vector<16x128xf32> -> vector<16x128xf32>
    %c0_3 = arith.constant 0 : index
    %c0_4 = arith.constant 0 : index
    %3 = vector.load %arg4[%c0_3, %c0_4] : memref<1x128xf32, #tpu.memory_space<vmem>>, vector<1x128xf32>
    %4 = vector.broadcast %3 : vector<1x128xf32> to vector<16x128xf32>
    %5 = arith.addf %2, %4 : vector<16x128xf32>
    %c0_5 = arith.constant 0 : index
    %c0_6 = arith.constant 0 : index
    %6 = vector.load %arg5[%c0_5, %c0_6] : memref<16x128xf32, #tpu.memory_space<vmem>>, vector<16x128xf32>
    tpu.vector_store %arg5[%c0_5, %c0_6], %5 {strides = array<i32>} : memref<16x128xf32, #tpu.memory_space<vmem>>, vector<16x128xf32>,
    return
  }
  func.func @transform_0(%arg0: i32, %arg1: i32) -> (i32, i32) {
    %c0_i32 = arith.constant 0 : i32
    %c0_i32_0 = arith.constant 0 : i32
    return %arg0, %c0_i32 : i32, i32
  }
  func.func @transform_1(%arg0: i32, %arg1: i32) -> (i32, i32) {
    %c0_i32 = arith.constant 0 : i32
    %c0_i32_0 = arith.constant 0 : i32
    return %c0_i32, %arg1 : i32, i32
  }
  func.func @transform_2(%arg0: i32, %arg1: i32) -> (i32, i32) {
    %c0_i32 = arith.constant 0 : i32
    %c0_i32_0 = arith.constant 0 : i32
    return %c0_i32, %arg1 : i32, i32
  }
  func.func @transform_3(%arg0: i32, %arg1: i32) -> (i32, i32) {
    %c0_i32 = arith.constant 0 : i32
    return %arg0, %arg1 : i32, i32
  }
}

</mosaic_0001>

<bundles_post_ra>
// kernel: tpu_custom_call.1
= control target key start
LH: loop header
LB: loop body
LE: loop exit
PB: predicated region body
PF: predicated region fallthrough
CT: control target
= control target key end

     0   :  { %8 = vsyncpa [#allocation3], 0  ;;  %s989_s0 = inlined_call_operand.hbm [shape: bf16[32,64], index: 0, kind: input, shape index: {}]   ;;  %s990_s1 = inlined_call_operand.hbm [shape: bf16[64,128], index: 1, kind: input, shape index: {}]   ;;  %s991_s2 = inlined_call_operand.vmem [shape: f32[1,128], index: 2, kind: input, shape index: {}]   ;;  %s992_s3 = inlined_call_operand.hbm [shape: f32[32,128], index: 3, kind: output, shape index: {}]  }
   0x1   :  { %10 = vsyncpa [#allocation3 + $0x1], 0 }
   0x2   :  { %11 = vsyncpa [#allocation6], 0 }
   0x3   :  { %12 = vsyncpa [#allocation4], 0 }
   0x4   :  { %14 = vsyncpa [#allocation4 + $0x1], 0  ;;  %s760_s12 = smov 0   ;;  %s762_s13 = smov 0  }
   0x5   :  { %s764_s14 = smov 0   ;;  %s766_s15 = smov 0  }
   0x6   :  { %s768_s16 = smov 0   ;;  %s770_s17 = smov 0  }
   0x7 LB: > { %s457_s18 = sadd.s32 4294967295, %s729_s17   ;;  %s458_s19 = sadd.s32 4294967294, %s729_s17   ;;  %s729_s17 = sphi %s770_s17, %s20_s17   ;;  %s725_s16 = sphi %s768_s16, %s1016_s16   ;;  %s721_s15 = sphi %s766_s15, %s1015_s15   ;;  %s717_s14 = sphi %s764_s14, %s1014_s14   ;;  %s713_s13 = sphi %s762_s13, %s1013_s13   ;;  %s709_s12 = sphi %s760_s12, %s1012_s12  }
   0x8   : > { %p52_p0 = scmp.ne.s32.totalorder %s713_s13, %s709_s12  ;;  %p794_p1 = scmp.eq.s32.totalorder %s457_s18, 0 }
   0x9   : > { %p798_p2 = scmp.eq.s32.totalorder %s457_s18, 1  ;;  %p136_p3 = scmp.eq.s32.totalorder %s458_s19, 1 }
   0xa   : > { %s997_s20 = scalar_select %p794_p1, 1, 0 }
   0xb   : > { %s998_s21 = scalar_select %p798_p2, 1, 0 }
   0xc   : > { %p804_p4 = por %p794_p1, %p52_p0  ;;  %p459_p5 = scmp.ge.s32.totalorder %s729_s17, 1 }
   0xd   : > { %p809_p6 = por %p136_p3, %p52_p0  ;;  %p143_p7 = scmp.lt.s32.totalorder %s729_s17, 3 }
   0xe   : > { %s999_s22 = scalar_select %p804_p4, 1, 0 }
   0xf   : > { %s1000_s23 = scalar_select %p809_p6, 1, 0 }
  0x10   : > { %p814_p8 = pnand %p459_p5, %p143_p7  ;;  %s731_s25 = smov [#allocation5]  }
  0x11   : > { %s157_s26 = sshll.u32 %s731_s25, 4  ;;  %s32_s28 = sadd.s32 1, %s725_s16  ;;  %s158_s26 = int_to_ptr.vmem [resolvable:$true] %s157_s26 }
  0x12   : > { %s1001_s24 = scalar_select %p814_p8, 1, 0 }
  0x13   : > { %p509_p9 = pneg %p814_p8  ;;  %s585_s4 = scalar_lea.hbm %s990_s1, 512 }
  0x14   : > { %p586_p12 = scmp.ne.s32.totalorder %s990_s1, %s585_s4  ;;  %p592_p5 = scmp.lt.u32.totalorder %s585_s4, %s990_s1 }
  0x15   : > { %p823_p11 = pnand %p509_p9, %p794_p1 }
  0x17   : > { %p587_p13 = pneg %p823_p11 }
  0x19   : > { %p588_p0 = pnand %p587_p13, %p586_p12 }
  0x1b   : > { %p589_p3 = pneg %p588_p0 }
  0x1d   : > { %p594_p7 = pnand %p592_p5, %p589_p3 }
  0x1f   : > { %597 = shalt.err (!%p594_p7)
}
  0x20   : > { %s598_s9 = scalar_lea.vmem %s158_s26, 512  ;;  %p606_p1 = scmp.lt.s32.totalorder %s158_s26, %s158_s26 }
  0x21   : > { %p599_p9 = scmp.ne.s32.totalorder %s158_s26, %s598_s9  ;;  %p607_p4 = scmp.lt.s32.totalorder %s598_s9, %s598_s9 }
  0x23   : > { %p601_p10 = pnand %p599_p9, %p587_p13  ;;  %p608_p8 = por %p607_p4, %p606_p1 }
  0x25   : > { %p602_p6 = pneg %p601_p10 }
  0x27   : > { %p609_p2 = pnand %p608_p8, %p602_p6 }
  0x29   : > { %612 = shalt.err (!%p609_p2)
}
  0x2a   : > { %s732_s10 = smov 64   ;;  %s733_s11 = smov 4  }
  0x2b   : > { %512 = dma.hbm_to_vmem [thread:$0]  (!%p823_p11), %s990_s1, 512, %s158_s26, [#allocation6], %s732_s10, %s732_s10, %s733_s11  }
  0x2c   : > { %p34_p1 = scmp.ge.s32.totalorder %s32_s28, 2  ;;  %s39_s25 = sadd.s32 1, %s717_s14 }
  0x2d   : > { %p46_p2 = scmp.ne.s32.totalorder %s717_s14, %s713_s13  ;;  %p47_p4 = scmp.eq.s32.totalorder %s729_s17, 0 }
  0x2e   : > { %s1018_s28 = smov (%p34_p1, %s32_s28), 0  ;;  %p1004_p8 = scmp.ne.s32.totalorder %s998_s21, 0 }
  0x2f   : > { %p853_p6 = por %p47_p4, %p46_p2  ;;  %s36_s30 = ssub.s32 %s725_s16, %s1018_s28 }
  0x30   : > { %p859_p10 = por %p1004_p8, %p46_p2  ;;  %p522_p12 = scmp.lt.s32.totalorder %s729_s17, 2 }
  0x31   : > { %p37_p11 = scmp.eq.s32.totalorder %s36_s30, 0  ;;  %s177_s26 = sand.u32 1, %s717_s14  }
  0x32   : > { %s463_s4 = sshll.u32 %s177_s26, 3  ;;  %s482_s6 = sshll.u32 %s725_s16, 7 }
  0x33   : > { %s868_s5 = scalar_select %p37_p11, %s717_s14, %s39_s25  }
  0x34   : > { %s874_s9 = scalar_lea.hbm %s989_s0, %s482_s6  ;;  %s181_s21 = scalar_lea.vmem [#allocation2], %s463_s4 }
  0x35   : > { %s188_s18 = sshll.u32 %s181_s21, 4  ;;  %p880_p13 = pnand %p522_p12, %p853_p6  ;;  %s876_s18 = int_to_ptr.vmem [resolvable:$true] %s188_s18 }
  0x36   : > { %s884_s25 = scalar_lea.sflag [#allocation3], %s177_s26  ;;  %s613_s30 = scalar_lea.hbm %s874_s9, 128 }
  0x37   : > { %p614_p0 = scmp.ne.s32.totalorder %s874_s9, %s613_s30  ;;  %p615_p3 = pneg %p880_p13 }
  0x38   : > { %s618_s29 = scalar_lea.hbm %s989_s0, 256  ;;  %p619_p9 = scmp.lt.u32.totalorder %s874_s9, %s989_s0 }
  0x39   : > { %p616_p5 = pnand %p615_p3, %p614_p0  ;;  %p620_p1 = scmp.lt.u32.totalorder %s618_s29, %s613_s30 }
  0x3a   : > { %p622_p4 = scmp.lt.u32.totalorder %s613_s30, %s874_s9 }
  0x3b   : > { %p617_p7 = pneg %p616_p5  ;;  %p621_p2 = por %p620_p1, %p619_p9 }
  0x3d   : > { %p623_p6 = por %p622_p4, %p621_p2 }
  0x3f   : > { %p624_p8 = pnand %p623_p6, %p617_p7 }
  0x41   : > { %627 = shalt.err (!%p624_p8)
}
  0x42   : > { %s628_s26 = scalar_lea.vmem %s876_s18, 128  ;;  %s734_s21 = smov [#allocation2]  }
  0x43   : > { %p629_p12 = scmp.ne.s32.totalorder %s876_s18, %s628_s26  ;;  %s633_s4 = sshll.u32 %s734_s21, 4  ;;  %s634_s4 = int_to_ptr.vmem [resolvable:$false] %s633_s4 }
  0x44   : > { %s635_s6 = scalar_lea.vmem %s634_s4, 256  ;;  %p636_p5 = scmp.lt.s32.totalorder %s876_s18, %s634_s4 }
  0x45   : > { %p631_p11 = pnand %p629_p12, %p615_p3  ;;  %p637_p9 = scmp.lt.s32.totalorder %s635_s6, %s628_s26 }
  0x47   : > { %p632_p0 = pneg %p631_p11  ;;  %p638_p1 = por %p637_p9, %p636_p5 }
  0x49   : > { %p639_p2 = pnand %p638_p1, %p632_p0 }
  0x4b   : > { %642 = shalt.err (!%p639_p2)
}
  0x4c   : > { %516 = dma.hbm_to_vmem [thread:$0]  (!%p880_p13), %s874_s9, 128, %s876_s18, %s884_s25, %s732_s10, %s732_s10, %s733_s11  }
  0x4d   : > { %p1007_p3 = scmp.ne.s32.totalorder %s1001_s24, 0 }
  0x4e   : > { %s918_s30 = sand.u32 (!%p1007_p3), 1, %s713_s13   ;;  %p1008_p7 = scmp.ne.s32.totalorder (!%p1007_p3), %s999_s22, 0 }
  0x4f   : > { %200 = sbr.rel (%p1007_p3) target bundleno = 338 (0x152), region = 32  ;;  %s467_s29 = sshll.u32 (!%p1007_p3), %s918_s30, 3 }
  0x50   : > { %s203_s7 = scalar_lea.sflag (!%p1007_p3), [#allocation3], %s918_s30  ;;  %s206_s8 = scalar_lea.vmem (!%p1007_p3), [#allocation2], %s467_s29 }
  0x56   : > { %696 = dma.done.wait (%p1008_p7), %s203_s7, 128  }
  0x57   : > { %698 = vsyncadd (%p1008_p7), %s203_s7, 4294967168  ;;  %p1009_p4 = scmp.ne.s32.totalorder %s997_s20, 0 }
  0x59   : > { %700 = dma.done.wait (%p1009_p4), [#allocation6], 512  }
  0x5a   : > { %702 = vsyncadd (%p1009_p4), [#allocation6], 4294966784  ;;  %v735_v0 = vmov 0.0   ;;  %vm736_vm0 = vmmov 0   ;;  %v580_v1 = vld [vmem:[#allocation5] sm:$0xff]   ;;  %v581_v2 = vld [vmem:[#allocation5 + $0x8] sm:$0xff]  }
  0x5b   : > { %489 = vmatprep.subr.bf16.mxu0 %v735_v0  ;;  %497 = vmatprep.mubr.msk.bf16.mxu0 %vm736_vm0, %v735_v0  ;;  %v582_v3 = vld [vmem:[#allocation5 + $0x10] sm:$0xff]   ;;  %v583_v4 = vld [vmem:[#allocation5 + $0x18] sm:$0xff]   ;;  %vm288_vm1 = vcmask 523264   ;;  %s469_s20 = sshll.u32 %s918_s30, 4  ;;  %s483_s9 = sshll.u32 %s721_s15, 8 }
  0x5c   : > { %490 = vmatpush3.bf16.msra.mxu0 %v580_v1  ;;  %v584_v5 = vld [vmem:[%s206_s8] sm:$0xff]   ;;  %s235_s10 = scalar_lea.vmem [#allocation7], %s469_s20  ;;  %s940_s25 = scalar_lea.hbm %s992_s3, %s483_s9 }
  0x5d   : > { %491 = vmatprep.subr.bf16.mxu0 %v735_v0  ;;  %v470_v6 = vld [vmem:[%s991_s2] ss:$0 sm:$0xff]  ;;  %s350_s11 = sshll.u32 %s235_s10, 4  ;;  %s336_s26 = scalar_lea.sflag [#allocation4], %s918_s30  ;;  %s935_s11 = int_to_ptr.vmem [resolvable:$true] %s350_s11 }
  0x5e   : > { %s643_s15 = scalar_lea.vmem %s935_s11, 256  ;;  %s737_s21 = smov [#allocation7]  }
  0x5f   : > { %p644_p13 = scmp.ne.s32.totalorder %s935_s11, %s643_s15  ;;  %s647_s4 = sshll.u32 %s737_s21, 4  ;;  %s648_s4 = int_to_ptr.vmem [resolvable:$false] %s647_s4 }
  0x60   : > { %492 = vmatpush3.bf16.msra.mxu0 %v581_v2  ;;  %s649_s6 = scalar_lea.vmem %s648_s4, 512  ;;  %p650_p12 = scmp.lt.s32.totalorder %s935_s11, %s648_s4 }
  0x61   : > { %493 = vmatprep.subr.bf16.mxu0 %v735_v0  ;;  %p645_p6 = pnand %p644_p13, %p859_p10  ;;  %p651_p11 = scmp.lt.s32.totalorder %s649_s6, %s643_s15 }
  0x63   : > { %p646_p8 = pneg %p645_p6  ;;  %p652_p0 = por %p651_p11, %p650_p12 }
  0x64   : > { %494 = vmatpush3.bf16.msra.mxu0 %v582_v3 }
  0x65   : > { %495 = vmatprep.subr.bf16.mxu0 %v735_v0  ;;  %p653_p5 = pnand %p652_p0, %p646_p8 }
  0x68   : > { %496 = vmatpush3.bf16.msra.mxu0 %v583_v4 }
  0x6b   : > { %498 = vmatmul.mubr.msk.bf16.vlgmr.msra.gmra.mrb[0].mxu0 %vm288_vm1, %v584_v5 }
 0x13e   : > { %v326_v7 = vpop.f32.mrb[0].mxu0 }
 0x13f   : > { %v327_v8 = vadd.f32 %v470_v6, %v326_v7  ;;  %v499_v9 = vpop.f32.mrb[1].mxu0 }
 0x140   : > { %v329_v10 = vpop.f32.mrb[2].mxu0 }
 0x141   : > { %333 = vst [vmem:[%s235_s10] sm:$0xff] %v327_v8  ;;  %v330_v11 = vadd.f32 %v470_v6, %v329_v10  ;;  %v500_v12 = vpop.f32.mrb[3].mxu0 }
 0x143   : > { %334 = vst [vmem:[%s235_s10 + $0x8] sm:$0xff] %v330_v11 }
 0x144   : > { %656 = shalt.err (!%p653_p5)
}
 0x145   : > { %s657_s29 = scalar_lea.hbm %s940_s25, 256  ;;  %s661_s20 = scalar_lea.hbm %s992_s3, 512 }
 0x146   : > { %p658_p9 = scmp.ne.s32.totalorder %s940_s25, %s657_s29  ;;  %p662_p3 = scmp.lt.u32.totalorder %s940_s25, %s992_s3 }
 0x147   : > { %p663_p7 = scmp.lt.u32.totalorder %s661_s20, %s657_s29  ;;  %p665_p13 = scmp.lt.u32.totalorder %s657_s29, %s940_s25 }
 0x148   : > { %p659_p1 = pnand %p658_p9, %p859_p10 }
 0x149   : > { %p664_p4 = por %p663_p7, %p662_p3 }
 0x14a   : > { %p660_p2 = pneg %p659_p1 }
 0x14b   : > { %p666_p6 = por %p665_p13, %p664_p4 }
 0x14d   : > { %p667_p8 = pnand %p666_p6, %p660_p2 }
 0x14f   : > { %670 = shalt.err (!%p667_p8)
}
 0x150   : > { %s738_s10 = smov 128   ;;  %s739_s9 = smov 8  }
 0x151   : > { %507 = dma.vmem_to_hbm [thread:$0]  (%p859_p10), %s935_s11, 256, %s940_s25, %s336_s26, %s738_s10, %s738_s10, %s739_s9  }
 0x152 PF: > { %s365_s18 = sand.u32 1, %s709_s12   ;;  %p1010_p12 = scmp.ne.s32.totalorder %s1000_s23, 0 }
 0x153   : > { %p1011_p11 = scmp.ge.s32.totalorder %s729_s17, 2  ;;  %s366_s19 = scalar_lea.sflag [#allocation4], %s365_s18 }
 0x155   : > { %p518_p0 = pnand %p1011_p11, %p1010_p12 }
 0x157   : > { %704 = dma.done.wait (!%p518_p0), %s366_s19, 256  }
 0x158   : > { %706 = vsyncadd (!%p518_p0), %s366_s19, 4294967040  ;;  %s20_s17 = sadd.s32 1, %s729_s17   ;;  %s1012_s12 = smov %s713_s13 }
 0x159   : > { %p17_p5 = scmp.ge.s32.totalorder %s20_s17, 4   ;;  %s1013_s13 = smov %s717_s14 }
 0x15a   : > { %s1014_s14 = smov %s868_s5  ;;  %s1015_s15 = smov %s725_s16 }
 0x15b   : > { %s1016_s16 = smov %s1018_s28  ;;  %19 = sbr.rel (!%p17_p5) target bundleno = 7 (0x7), region = 85 }
 0x162   :  { %371 = vsyncpa [#allocation3], 1 }
 0x163   :  { %373 = vsyncpa [#allocation3 + $0x1], 1 }
 0x164   :  { %374 = vsyncpa [#allocation6], 1 }
 0x165   :  { %375 = vsyncpa [#allocation4], 1 }
 0x166   :  { %377 = vsyncpa [#allocation4 + $0x1], 1 }

</bundles_post_ra>
